<compile_context>
chip_gen: v7x
topology: tpu7x:2x2x1
jax: 0.10.0
libtpu: 0.0.40
codegen_flags: <defaults>
</compile_context>

<pallas_src>
from functools import partial

import jax
import jax.numpy as jnp
from jax import lax
from jax.experimental import pallas as pl
from jax.experimental.pallas import tpu as pltpu


def history_attention_kernel(len_ref, hist_ref, w_ref, out_ref):
    """One batch tile.

    len_ref : SMEM (1,) int32   -- number of valid ring slots (1..max_T)
    hist_ref: VMEM (Bt, T, H)   -- history ring buffer tile (bf16)
    w_ref   : VMEM (1, H) f32   -- history_net weight
    out_ref : VMEM (Bt, H) f32  -- attended history
    """
    Bt, T, H = hist_ref.shape
    n_valid = len_ref[0]

    # history_net score per slot on the MXU (flash-attn 'bqd,bkd->bqk', q=1).
    # Biases and the current-word score are constant over T -> cancel in softmax.
    w = jnp.broadcast_to(w_ref[...].astype(hist_ref.dtype)[None], (Bt, 1, H))
    scores = jnp.einsum("bqh,bth->bqt", w, hist_ref[...],
                        preferred_element_type=jnp.float32)        # (Bt, 1, T) f32

    # Mask ring slots that have not been written yet (mask & exp stay in f32).
    t_idx = lax.broadcasted_iota(jnp.int32, scores.shape, 2)
    scores = jnp.where(t_idx < n_valid, scores, -1e30)

    # Numerically stable softmax; exact divide (denominator is (Bt,1,1), a
    # divide is essentially free here -- no approx reciprocal).  The maximum
    # guards the (unreachable through the wrapper) all-masked case.
    m = jnp.max(scores, axis=-1, keepdims=True)                    # (Bt, 1, 1)
    e = jnp.exp(scores - m)                                        # (Bt, 1, T) f32
    denom = jnp.maximum(jnp.sum(e, axis=-1, keepdims=True), 1e-30)

    # Softmax-weighted history sum on the MXU ('bqk,bkd->bqd' pattern, q=1),
    # bf16 operands with f32 accumulation.
    weighted = jnp.einsum("bqt,bth->bqh", e.astype(hist_ref.dtype), hist_ref[...],
                          preferred_element_type=jnp.float32)      # (Bt, 1, H) f32
    out_ref[...] = (weighted / denom).reshape(out_ref.shape).astype(out_ref.dtype)


def _attend_history(hist, w_hist, valid_len, *, b_tile):
    """pallas_call wrapper: softmax-attend over the (B, max_T, H) ring buffer."""
    B, max_T, H = hist.shape
    assert B % b_tile == 0, "batch must be a multiple of b_tile"
    assert b_tile % 8 == 0 or b_tile == B, "b_tile should be a multiple of 8"

    # VMEM budget guard: v7x has 64 MiB physical / 32 MiB default scoped VMEM.
    # Double-buffered history block + output + small f32 temps must fit.
    hist_block = b_tile * max_T * H * jnp.dtype(hist.dtype).itemsize
    est_vmem = 2 * hist_block + 4 * b_tile * H * 4 + (1 << 20)
    assert est_vmem <= 24 * (1 << 20), (
        f"block working set ~{est_vmem} B exceeds the 24 MiB budget; shrink b_tile")

    grid = (pl.cdiv(B, b_tile),)
    grid_spec = pltpu.PrefetchScalarGridSpec(
        num_scalar_prefetch=1,
        grid=grid,
        in_specs=[
            pl.BlockSpec((b_tile, max_T, H), lambda b, l: (b, 0, 0)),
            pl.BlockSpec((1, H), lambda b, l: (0, 0)),
        ],
        out_specs=pl.BlockSpec((b_tile, H), lambda b, l: (b, 0)),
    )
    return pl.pallas_call(
        history_attention_kernel,
        out_shape=jax.ShapeDtypeStruct((B, H), jnp.float32),
        grid_spec=grid_spec,
        compiler_params=pltpu.CompilerParams(
            dimension_semantics=("parallel",),
            vmem_limit_bytes=32 * 1024 * 1024,
        ),
    )(valid_len, hist, w_hist)


@partial(jax.jit, static_argnames=("b_tile",), donate_argnums=(0,))
def history_attention_step(hist_buf, previous, w_hist, step, count, *, b_tile):
    """One fused generation step: in-place ring write + attention kernel."""
    B, max_T, H = hist_buf.shape
    pos = lax.rem(step, jnp.int32(max_T))
    hist_buf = lax.dynamic_update_slice(
        hist_buf,
        previous.astype(hist_buf.dtype)[:, None, :],
        (jnp.int32(0), pos, jnp.int32(0)),
    )
    step = step + jnp.int32(1)
    count = jnp.minimum(count + jnp.int32(1), jnp.int32(max_T))
    out = _attend_history(hist_buf, w_hist, count.reshape((1,)), b_tile=b_tile)
    return out, hist_buf, step, count


def history_attention_reference(current, history, w_hist, b_hist, w_hid, b_hid):
    """Pure-JAX reference mirroring the full PyTorch forward (eval dropout).

    history: (B, T, H) chronological f32, T = current valid history length.
    Keeps the (algebraically null) current/bias path to prove equivalence.
    """
    scores = jnp.sum(history * w_hist[0][None, None, :], axis=-1) + b_hist[0, 0]
    cur_score = jnp.sum(current * w_hid[0][None, :], axis=-1) + b_hid[0, 0]
    att = jax.nn.softmax(scores + cur_score[:, None], axis=-1)        # (B, T)
    return jnp.sum(history * att[:, :, None], axis=1)                 # (B, H)


class HistoryAttention:
    """Stateful wrapper: device-resident bf16 ring buffer + one fused jit step."""

    def __init__(self, input_size, hidden_size, key, max_history_size=16,
                 b_tile=8, history_dtype=jnp.bfloat16):
        k1, k2, k3, k4 = jax.random.split(key, 4)
        bh = 1.0 / (hidden_size ** 0.5)
        bi = 1.0 / (input_size ** 0.5)
        # nn.Linear(hidden_size, 1): weight (1, hidden_size), bias (1,)
        self.w_hist = jax.random.uniform(k1, (1, hidden_size), jnp.float32, -bh, bh)
        self.b_hist = jax.random.uniform(k2, (1, 1), jnp.float32, -bh, bh)
        # nn.Linear(input_size, 1): weight (1, input_size), bias (1,)
        # (kept only for the reference check: cancels inside the softmax)
        self.w_hid = jax.random.uniform(k3, (1, input_size), jnp.float32, -bi, bi)
        self.b_hid = jax.random.uniform(k4, (1, 1), jnp.float32, -bi, bi)

        self.hidden_size = hidden_size
        self.max_history_size = max_history_size   # prefer a multiple of 8
        self.b_tile = b_tile
        self.history_dtype = history_dtype
        self.hist_buf = None    # (B, max_T, H) device ring buffer (bf16)
        self.step = None        # device int32: total entries ever written
        self.count = None       # device int32: valid entries (<= max_T)

    def __call__(self, current, previous):
        # `current` only shifts every logit by a per-row constant -> no effect
        # on the softmax; it is accepted for API parity but unused (eval mode).
        del current
        B, H = previous.shape
        if self.hist_buf is None:
            self.hist_buf = jnp.zeros((B, self.max_history_size, H),
                                      self.history_dtype)
            self.step = jnp.zeros((), jnp.int32)
            self.count = jnp.zeros((), jnp.int32)
        out, self.hist_buf, self.step, self.count = history_attention_step(
            self.hist_buf, previous, self.w_hist, self.step, self.count,
            b_tile=self.b_tile)
        return out

    def reset_history(self):
        self.hist_buf = None
        self.step = None
        self.count = None


if __name__ == "__main__":
    B = 16                # 2 programs of b_tile=8 -> batch splits across cores
    input_size = 32
    hidden_size = 128     # full lane width -> unmasked vector stores
    max_history = 16      # PyTorch default 15 padded up to a full 8-sublane tile
    b_tile = 8
    steps = 20            # > max_history -> exercises masking AND ring wrap

    key = jax.random.PRNGKey(0)
    kparams, kdata = jax.random.split(key)
    module = HistoryAttention(input_size, hidden_size, kparams,
                              max_history_size=max_history, b_tile=b_tile)

    chrono_history = []   # host-side chronological copy, only for the reference
    checks = []
    out = None
    for t in range(steps):
        kdata, kc, kp = jax.random.split(kdata, 3)
        cur = jax.random.normal(kc, (B, input_size), jnp.float32)
        prev = jax.random.normal(kp, (B, hidden_size), jnp.float32)
        # The kernel attends over bf16-stored history; mirror that rounding in
        # the reference so the check isolates the kernel arithmetic.
        chrono_history.append(prev.astype(jnp.bfloat16).astype(jnp.float32))
        chrono_history = chrono_history[-max_history:]
        out = module(cur, prev)

        # Validate a partially filled (masked) step and the final wrapped step.
        if t == 5 or t == steps - 1:
            hist_chrono = jnp.stack(chrono_history, axis=1)   # (B, T, H)
            ref = history_attention_reference(cur, hist_chrono, module.w_hist,
                                              module.b_hist, module.w_hid,
                                              module.b_hid)
            checks.append((t, jax.block_until_ready(out),
                           jax.block_until_ready(ref)))

    out = jax.block_until_ready(out)
    assert out.shape == (B, hidden_size)

    for t, got, ref in checks:
        # Tolerance covers bf16 history storage and the bf16 history_net weight
        # / attention probabilities fed to the MXU (f32 accumulation); the
        # softmax itself runs in f32 with an exact divide.
        err = float(jnp.max(jnp.abs(got - ref)))
        assert jnp.allclose(got, ref, atol=2e-2, rtol=2e-2), (
            f"step {t}: max abs err {err}")

    print("KERNEL_OK")
</pallas_src>

<mosaic_0001>
module attributes {stable_mosaic.version = 11 : i64} {
  func.func @history_attention_kernel(%arg0: i32, %arg1: memref<1xi32, #tpu.memory_space<smem>>, %arg2: memref<8x16x128xbf16, #tpu.memory_space<vmem>>, %arg3: memref<1x128xf32, #tpu.memory_space<vmem>>, %arg4: memref<8x128xf32, #tpu.memory_space<vmem>>) attributes {dimension_semantics = [#tpu.dimension_semantics<parallel>], iteration_bounds = array<i64: 2>, scalar_prefetch = 1 : i64, scratch_operands = 0 : i64, tpu.core_type = #tpu.core_type<tc>, window_params = [{transform_indices = @transform_0, window_bounds = array<i64: 8, 16, 128>}, {pipeline_mode = #tpu.pipeline_mode<synchronous>, transform_indices = @transform_1, window_bounds = array<i64: 1, 128>}, {transform_indices = @transform_2, window_bounds = array<i64: 8, 128>}]} {
    %c0 = arith.constant 0 : index
    %0 = memref.load %arg1[%c0] : memref<1xi32, #tpu.memory_space<smem>>
    %c0_0 = arith.constant 0 : index
    %c0_1 = arith.constant 0 : index
    %1 = vector.load %arg3[%c0_0, %c0_1] : memref<1x128xf32, #tpu.memory_space<vmem>>, vector<1x128xf32>
    %2 = arith.truncf %1 : vector<1x128xf32> to vector<1x128xbf16>
    %3 = vector.shape_cast %2 : vector<1x128xbf16> to vector<1x1x128xbf16>
    %4 = vector.shape_cast %3 : vector<1x1x128xbf16> to vector<1x1x128xbf16>
    %5 = vector.broadcast %4 : vector<1x1x128xbf16> to vector<8x1x128xbf16>
    %c0_2 = arith.constant 0 : index
    %c0_3 = arith.constant 0 : index
    %c0_4 = arith.constant 0 : index
    %6 = vector.load %arg2[%c0_2, %c0_3, %c0_4] : memref<8x16x128xbf16, #tpu.memory_space<vmem>>, vector<8x16x128xbf16>
    "tpu.trace_start"() <{level = 10 : i32, message = "bqh,bth->bqt"}> : () -> ()
    %cst = arith.constant dense<0.000000e+00> : vector<8x1x16xf32>
    %7 = tpu.matmul %5, %6, %cst {dimension_numbers = #tpu.dot_dimension_numbers<[2], [2], [1], [1], [0, 0, 0, 1, 1, 1], [0], [0]>} : vector<8x1x128xbf16>, vector<8x16x128xbf16>, vector<8x1x16xf32> -> vector<8x1x16xf32>
    "tpu.trace_stop"() : () -> ()
    %8 = tpu.iota {dimensions = array<i32: 2>} : vector<8x1x16xi32>
    %9 = vector.broadcast %0 : i32 to vector<8x1x16xi32>
    %10 = arith.cmpi slt, %8, %9 : vector<8x1x16xi32>
    %cst_5 = arith.constant -1.000000e+30 : f32
    %11 = vector.broadcast %cst_5 : f32 to vector<8x1x16xf32>
    %12 = arith.select %10, %7, %11 : vector<8x1x16xi1>, vector<8x1x16xf32>
    %cst_6 = arith.constant dense<0xFF800000> : vector<8x1xf32>
    %13 = vector.multi_reduction <maximumf>, %12, %cst_6 [2] : vector<8x1x16xf32> to vector<8x1xf32>
    %14 = vector.shape_cast %13 : vector<8x1xf32> to vector<8x1x1xf32>
    %15 = vector.broadcast %14 : vector<8x1x1xf32> to vector<8x1x16xf32>
    %16 = arith.subf %12, %15 : vector<8x1x16xf32>
    %17 = math.exp %16 : vector<8x1x16xf32>
    %cst_7 = arith.constant dense<0.000000e+00> : vector<8x1xf32>
    %18 = vector.multi_reduction <add>, %17, %cst_7 [2] : vector<8x1x16xf32> to vector<8x1xf32>
    %19 = vector.shape_cast %18 : vector<8x1xf32> to vector<8x1x1xf32>
    %cst_8 = arith.constant 1.000000e-30 : f32
    %20 = vector.broadcast %cst_8 : f32 to vector<8x1x1xf32>
    %21 = arith.maximumf %19, %20 : vector<8x1x1xf32>
    %22 = arith.truncf %17 : vector<8x1x16xf32> to vector<8x1x16xbf16>
    %c0_9 = arith.constant 0 : index
    %c0_10 = arith.constant 0 : index
    %c0_11 = arith.constant 0 : index
    %23 = vector.load %arg2[%c0_9, %c0_10, %c0_11] : memref<8x16x128xbf16, #tpu.memory_space<vmem>>, vector<8x16x128xbf16>
    "tpu.trace_start"() <{level = 10 : i32, message = "bqt,bth->bqh"}> : () -> ()
    %cst_12 = arith.constant dense<0.000000e+00> : vector<8x1x128xf32>
    %24 = tpu.matmul %22, %23, %cst_12 {dimension_numbers = #tpu.dot_dimension_numbers<[2], [1], [1], [2], [0, 0, 0, 1, 1, 2], [0], [0]>} : vector<8x1x16xbf16>, vector<8x16x128xbf16>, vector<8x1x128xf32> -> vector<8x1x128xf32>
    "tpu.trace_stop"() : () -> ()
    %25 = vector.broadcast %21 : vector<8x1x1xf32> to vector<8x1x128xf32>
    %26 = arith.divf %24, %25 : vector<8x1x128xf32>
    %27 = vector.shape_cast %26 : vector<8x1x128xf32> to vector<8x128xf32>
    %c0_13 = arith.constant 0 : index
    %c0_14 = arith.constant 0 : index
    %28 = vector.load %arg4[%c0_13, %c0_14] : memref<8x128xf32, #tpu.memory_space<vmem>>, vector<8x128xf32>
    tpu.vector_store %arg4[%c0_13, %c0_14], %27 {strides = array<i32>} : memref<8x128xf32, #tpu.memory_space<vmem>>, vector<8x128xf32>,
    return
  }
  func.func @transform_0(%arg0: i32, %arg1: memref<1xi32, #tpu.memory_space<smem>>) -> (i32, i32, i32) {
    %c0_i32 = arith.constant 0 : i32
    %c0_i32_0 = arith.constant 0 : i32
    %c0_i32_1 = arith.constant 0 : i32
    return %arg0, %c0_i32, %c0_i32_0 : i32, i32, i32
  }
  func.func @transform_1(%arg0: i32, %arg1: memref<1xi32, #tpu.memory_space<smem>>) -> (i32, i32) {
    %c0_i32 = arith.constant 0 : i32
    %c0_i32_0 = arith.constant 0 : i32
    %c0_i32_1 = arith.constant 0 : i32
    return %c0_i32, %c0_i32_0 : i32, i32
  }
  func.func @transform_2(%arg0: i32, %arg1: memref<1xi32, #tpu.memory_space<smem>>) -> (i32, i32) {
    %c0_i32 = arith.constant 0 : i32
    %c0_i32_0 = arith.constant 0 : i32
    return %arg0, %c0_i32 : i32, i32
  }
}

</mosaic_0001>

<bundles_post_ra>
// kernel: history_attention_step.1
= control target key start
LH: loop header
LB: loop body
LE: loop exit
PB: predicated region body
PF: predicated region fallthrough
CT: control target
= control target key end

     0   :  { %s1878_s0 = inlined_call_operand.<no memory space> [shape: s32[1], index: 0, kind: input, shape index: {}]   ;;  %s1879_s1 = inlined_call_operand.hbm [shape: bf16[16,16,128], index: 1, kind: input, shape index: {}]   ;;  %s1880_s2 = inlined_call_operand.vmem [shape: f32[1,128], index: 2, kind: input, shape index: {}]   ;;  %s1881_s3 = inlined_call_operand.hbm [shape: f32[16,128], index: 3, kind: output, shape index: {}]  }
   0x1   :  { %8 = sst [smem:[#allocation3]] %s1878_s0 }
   0x2   :  { %9 = vsyncpa [#allocation5], 0 }
   0x3   :  { %11 = vsyncpa [#allocation5 + $0x1], 0 }
   0x4   :  { %12 = vsyncpa [#allocation6], 0 }
   0x5   :  { %14 = vsyncpa [#allocation6 + $0x1], 0  ;;  %s1588_s14 = smov 0   ;;  %s1590_s15 = smov 0  }
   0x6   :  { %s1592_s16 = smov 0   ;;  %s1594_s17 = smov 0  }
   0x7 LB: > { %s1609_s0 = sadd.s32 4294967295, %s1557_s17   ;;  %s1195_s18 = sadd.s32 4294967294, %s1557_s17   ;;  %s1557_s17 = sphi %s1594_s17, %s1896_s17   ;;  %s1553_s16 = sphi %s1592_s16, %s1895_s16   ;;  %s1549_s15 = sphi %s1590_s15, %s1894_s15   ;;  %s1545_s14 = sphi %s1588_s14, %s1893_s14  }
   0x8   : > { %s1613_s19 = sadd.s32 1, %s1557_s17   ;;  %s27_s20 = sadd.s32 1, %s1553_s16 }
   0x9   : > { %s24_s21 = ssub.s32 %s1557_s17, %s1613_s19  ;;  %p34_p0 = scmp.ne.s32.totalorder %s1553_s16, %s1549_s15 }
   0xa   : > { %p25_p1 = scmp.eq.s32.totalorder %s24_s21, 0  ;;  %p35_p2 = scmp.eq.s32.totalorder %s1557_s17, 0 }
   0xb   : > { %p40_p3 = scmp.ne.s32.totalorder %s1549_s15, %s1545_s14  ;;  %p41_p4 = scmp.eq.s32.totalorder %s1609_s0, 0 }
   0xc   : > { %s1625_s22 = scalar_select %p25_p1, %s1553_s16, %s27_s20  }
   0xd   : > { %p1627_p5 = por %p35_p2, %p34_p0  ;;  %p1631_p6 = por %p41_p4, %p40_p3 }
   0xe   : > { %p85_p7 = scmp.eq.s32.totalorder %s1609_s0, 1  ;;  %p91_p8 = scmp.eq.s32.totalorder %s1195_s18, 1 }
   0xf   : > { %p1375_p10 = scmp.lt.s32.totalorder %s1557_s17, 2  ;;  %s114_s27 = sand.u32 1, %s1553_s16  }
  0x10   : > { %p1638_p11 = por %p85_p7, %p34_p0  ;;  %p1642_p12 = por %p91_p8, %p40_p3 }
  0x11   : > { %s1234_s28 = sshll.u32 %s1557_s17, 10  ;;  %s1198_s29 = sshll.u32 %s114_s27, 6 }
  0x12   : > { %s1885_s25 = scalar_select %p1638_p11, 1, 0 }
  0x13   : > { %s1886_s26 = scalar_select %p1642_p12, 1, 0 }
  0x14   : > { %s1651_s5 = scalar_lea.hbm %s1879_s1, %s1234_s28  ;;  %s118_s6 = scalar_lea.vmem [#allocation4], %s1198_s29 }
  0x15   : > { %s126_s7 = sshll.u32 %s118_s6, 4  ;;  %p1655_p13 = pnand %p1375_p10, %p1627_p5  ;;  %s1659_s7 = int_to_ptr.vmem [resolvable:$true] %s126_s7 }
  0x16   : > { %s1661_s9 = scalar_lea.sflag [#allocation5], %s114_s27  ;;  %s1461_s10 = scalar_lea.hbm %s1651_s5, 1024 }
  0x17   : > { %p1462_p0 = scmp.ne.s32.totalorder %s1651_s5, %s1461_s10  ;;  %p1463_p1 = pneg %p1655_p13 }
  0x18   : > { %s1466_s13 = scalar_lea.hbm %s1879_s1, 2048  ;;  %p1467_p4 = scmp.lt.u32.totalorder %s1651_s5, %s1879_s1 }
  0x19   : > { %p1464_p2 = pnand %p1463_p1, %p1462_p0  ;;  %p1468_p5 = scmp.lt.u32.totalorder %s1466_s13, %s1461_s10 }
  0x1a   : > { %p1470_p8 = scmp.lt.u32.totalorder %s1461_s10, %s1651_s5 }
  0x1b   : > { %p1465_p3 = pneg %p1464_p2  ;;  %p1469_p7 = por %p1468_p5, %p1467_p4 }
  0x1d   : > { %p1471_p10 = por %p1470_p8, %p1469_p7 }
  0x1f   : > { %p1472_p9 = pnand %p1471_p10, %p1465_p3 }
  0x21   : > { %1475 = shalt.err (!%p1472_p9)
}
  0x22   : > { %s1476_s21 = scalar_lea.vmem %s1659_s7, 1024  ;;  %s1559_s23 = smov [#allocation4]  }
  0x23   : > { %p1477_p0 = scmp.ne.s32.totalorder %s1659_s7, %s1476_s21  ;;  %s1481_s27 = sshll.u32 %s1559_s23, 4  ;;  %s1482_s27 = int_to_ptr.vmem [resolvable:$false] %s1481_s27 }
  0x24   : > { %s1483_s28 = scalar_lea.vmem %s1482_s27, 2048  ;;  %p1484_p11 = scmp.lt.s32.totalorder %s1659_s7, %s1482_s27 }
  0x25   : > { %p1479_p2 = pnand %p1477_p0, %p1463_p1  ;;  %p1485_p4 = scmp.lt.s32.totalorder %s1483_s28, %s1476_s21 }
  0x27   : > { %p1480_p12 = pneg %p1479_p2  ;;  %p1486_p5 = por %p1485_p4, %p1484_p11 }
  0x29   : > { %p1487_p7 = pnand %p1486_p5, %p1480_p12 }
  0x2b   : > { %1490 = shalt.err (!%p1487_p7)
}
  0x2c   : > { %s1560_s29 = smov 64   ;;  %s1561_s30 = smov 4  }
  0x2d   : > { %1370 = dma.hbm_to_vmem [thread:$0]  (!%p1655_p13), %s1651_s5, 1024, %s1659_s7, %s1661_s9, %s1560_s29, %s1560_s29, %s1561_s30  }
  0x2e   : > { %p1202_p9 = scmp.ge.s32.totalorder %s1557_s17, 1  ;;  %p134_p1 = scmp.lt.s32.totalorder %s1557_s17, 3 }
  0x30   : > { %p135_p3 = pnand %p1202_p9, %p134_p1 }
  0x31   : > { %s1692_s4 = sand.u32 (!%p135_p3), 1, %s1549_s15  }
  0x32   : > { %138 = sbr.rel (%p135_p3) target bundleno = 700 (0x2bc), region = 28  ;;  %s1203_s6 = sshll.u32 (!%p135_p3), %s1692_s4, 6 }
  0x33   : > { %s141_s10 = scalar_lea.sflag (!%p135_p3), [#allocation5], %s1692_s4  ;;  %s1696_s11 = scalar_lea.vmem (!%p135_p3), [#allocation4], %s1203_s6 }
  0x39   : > { %1536 = dma.done.wait (%p1631_p6), %s141_s10, 1024  }
  0x3a   : > { %1538 = vsyncadd (%p1631_p6), %s141_s10, 4294966272  ;;  %v1562_v0 = vmov 0.0   ;;  %vm1563_vm0 = vmmov 0   ;;  %v1413_v1 = vld [vmem:[%s1696_s11] sm:$0xff]   ;;  %v1414_v2 = vld [vmem:[%s1696_s11 + $0x8] sm:$0xff]   ;;  %s167_s7 = sld [smem:[#allocation3]]  ;;  %v554_v11 = vlaneseq }
  0x3b   : > { %1267 = vmatprep.subr.bf16.mxu0 %v1562_v0  ;;  %1273 = vmatprep.subr.bf16.mxu1 %v1562_v0  ;;  %v168_v3 = vld [vmem:[%s1880_s2] sm:$0x1]  ;;  %v1415_v5 = vld [vmem:[%s1696_s11 + $0x10] sm:$0xff]   ;;  %v1416_v6 = vld [vmem:[%s1696_s11 + $0x18] sm:$0xff]   ;;  %vm566_vm2 = vcmask 122880   ;;  %vm677_vm3 = vcmask 130048  }
  0x3c   : > { %1269 = vmatprep.mubr.msk.bf16.mxu0 %vm1563_vm0, %v1562_v0  ;;  %1275 = vmatprep.mubr.msk.bf16.mxu1 %vm1563_vm0, %v1562_v0  ;;  %v169_v4 = vpack.c.bf16 %v168_v3, %v168_v3  ;;  %v1417_v7 = vld [vmem:[%s1696_s11 + $0x20] sm:$0xff]   ;;  %v1418_v8 = vld [vmem:[%s1696_s11 + $0x28] sm:$0xff]   ;;  %v1419_v9 = vld [vmem:[%s1696_s11 + $0x30] sm:$0xff]   ;;  %v555_v12 = vand.u32 127, %v554_v11  ;;  %vm1089_vm4 = vcmask 1041409   ;;  %vm1092_vm5 = vcmask 1042434  }
  0x3d   : > { %1268 = vmatpush3.bf16.xpose.msra.mxu0 %v1413_v1  ;;  %1274 = vmatpush3.bf16.xpose.msra.mxu1 %v1414_v2  ;;  %v1420_v10 = vld [vmem:[%s1696_s11 + $0x38] sm:$0xff]   ;;  %v1421_v63 = vld [vmem:[%s1696_s11] sm:$0xff]   ;;  %v1422_v1 = vld [vmem:[%s1696_s11 + $0x8] sm:$0xff]   ;;  %vm1095_vm6 = vcmask 1043459   ;;  %vm1098_vm7 = vcmask 1044484   ;;  %vm1101_vm8 = vcmask 1045509  }
  0x3e   : > { %1279 = vmatprep.subr.bf16.mxu0 %v1562_v0  ;;  %1285 = vmatprep.subr.bf16.mxu1 %v1562_v0  ;;  %s1204_s8 = sshll.u32 %s1692_s4, 3  ;;  %vm1104_vm9 = vcmask 1046534   ;;  %s1230_s9 = sshll.u32 %s1609_s0, 7  ;;  %vm1107_vm10 = vcmask 1047559  }
  0x3f   : > { %s164_s12 = scalar_lea.vmem [#allocation7], %s1204_s8  ;;  %s1834_s21 = scalar_lea.hbm %s1881_s3, %s1230_s9 }
  0x40   : > { %v556_v13 = vstv %s167_s7  ;;  %s1125_s13 = sshll.u32 %s164_s12, 4  ;;  %s1112_s23 = scalar_lea.sflag [#allocation6], %s1692_s4  ;;  %s1836_s13 = int_to_ptr.vmem [resolvable:$true] %s1125_s13 }
  0x41   : > { %vm1743_vm1 = vcmp.lt.s32.totalorder %v555_v12, %v556_v13  ;;  %s1491_s0 = scalar_lea.vmem %s1836_s13, 128  ;;  %p1890_p11 = scmp.ne.s32.totalorder %s1885_s25, 0 }
  0x42   : > { %p1492_p6 = scmp.ne.s32.totalorder %s1836_s13, %s1491_s0  ;;  %s1564_s27 = smov [#allocation7]  }
  0x43   : > { %s1495_s28 = sshll.u32 %s1564_s27, 4  ;;  %s1496_s28 = int_to_ptr.vmem [resolvable:$false] %s1495_s28 }
  0x44   : > { %1270 = vmatmul.mubr.bf16.vlgmr.msra.gmra.mrb[0].mxu0 %v169_v4  ;;  %1276 = vmatmul.mubr.bf16.vlgmr.msra.gmra.mrb[0].mxu1 %v169_v4  ;;  %p1493_p12 = pnand %p1492_p6, %p1890_p11  ;;  %s1497_s29 = scalar_lea.vmem %s1496_s28, 256 }
  0x45   : > { %1280 = vmatpush3.bf16.xpose.msra.mxu0 %v1415_v5  ;;  %1286 = vmatpush3.bf16.xpose.msra.mxu1 %v1416_v6  ;;  %p1498_p8 = scmp.lt.s32.totalorder %s1836_s13, %s1496_s28  ;;  %p1499_p10 = scmp.lt.s32.totalorder %s1497_s29, %s1491_s0 }
  0x46   : > { %1281 = vmatprep.mubr.msk.bf16.mxu0 %vm1563_vm0, %v1562_v0  ;;  %1287 = vmatprep.mubr.msk.bf16.mxu1 %vm1563_vm0, %v1562_v0  ;;  %p1494_p13 = pneg %p1493_p12 }
  0x47   : > { %1291 = vmatprep.subr.bf16.mxu0 %v1562_v0  ;;  %1297 = vmatprep.subr.bf16.mxu1 %v1562_v0  ;;  %p1500_p0 = por %p1499_p10, %p1498_p8 }
  0x49   : > { %p1501_p2 = pnand %p1500_p0, %p1494_p13 }
  0x4c   : > { %1282 = vmatmul.mubr.bf16.vlgmr.msra.gmra.mrb[4].mxu0 %v169_v4  ;;  %1288 = vmatmul.mubr.bf16.vlgmr.msra.gmra.mrb[4].mxu1 %v169_v4 }
  0x4d   : > { %1292 = vmatpush3.bf16.xpose.msra.mxu0 %v1417_v7  ;;  %1298 = vmatpush3.bf16.xpose.msra.mxu1 %v1418_v8 }
  0x4e   : > { %1293 = vmatprep.mubr.msk.bf16.mxu0 %vm1563_vm0, %v1562_v0  ;;  %1299 = vmatprep.mubr.msk.bf16.mxu1 %vm1563_vm0, %v1562_v0 }
  0x4f   : > { %1303 = vmatprep.subr.bf16.mxu0 %v1562_v0  ;;  %1309 = vmatprep.subr.bf16.mxu1 %v1562_v0 }
  0x54   : > { %1294 = vmatmul.mubr.bf16.vlgmr.msra.gmra.mrb[8].mxu0 %v169_v4  ;;  %1300 = vmatmul.mubr.bf16.vlgmr.msra.gmra.mrb[8].mxu1 %v169_v4 }
  0x55   : > { %1304 = vmatpush3.bf16.xpose.msra.mxu0 %v1419_v9  ;;  %1310 = vmatpush3.bf16.xpose.msra.mxu1 %v1420_v10 }
  0x56   : > { %1305 = vmatprep.mubr.msk.bf16.mxu0 %vm1563_vm0, %v1562_v0  ;;  %1311 = vmatprep.mubr.msk.bf16.mxu1 %vm1563_vm0, %v1562_v0 }
  0x57   : > { %1315 = vmatprep.subr.bf16.mxu0 %v1562_v0  ;;  %1321 = vmatprep.subr.bf16.mxu1 %v1562_v0 }
  0x5c   : > { %1306 = vmatmul.mubr.bf16.vlgmr.msra.gmra.mrb[12].mxu0 %v169_v4  ;;  %1312 = vmatmul.mubr.bf16.vlgmr.msra.gmra.mrb[12].mxu1 %v169_v4 }
  0x5d   : > { %1317 = vmatprep.mubr.msk.bf16.mxu0 %vm1563_vm0, %v1562_v0  ;;  %1323 = vmatprep.mubr.msk.bf16.mxu1 %vm1563_vm0, %v1562_v0 }
  0x5e   : > { %1316 = vmatpush3.bf16.msra.mxu0 %v1421_v63  ;;  %1322 = vmatpush3.bf16.msra.mxu1 %v1422_v1 }
  0x5f   : > { %1327 = vmatprep.subr.bf16.mxu0 %v1562_v0  ;;  %1333 = vmatprep.subr.bf16.mxu1 %v1562_v0 }
 0x117   : > { %v226_v15 = vpop.f32.mrb[0].mxu0  ;;  %v272_v18 = vpop.f32.mrb[0].mxu1 }
 0x118   : > { %v1749_v16 = vsel %vm1743_vm1, %v226_v15, -1e+30  ;;  %v1271_v17 = vpop.f32.mrb[1].mxu0  ;;  %v1753_v20 = vsel %vm1743_vm1, %v272_v18, -1e+30  ;;  %v1277_v21 = vpop.f32.mrb[1].mxu1 }
 0x119   : > { %v229_v19 = vpop.f32.mrb[2].mxu0  ;;  %v567_v22 = vsel %vm566_vm2, %v1749_v16, -inf  ;;  %v275_v24 = vpop.f32.mrb[2].mxu1  ;;  %v570_v26 = vsel %vm566_vm2, %v1753_v20, -inf  ;;  %v1423_v15 = vld [vmem:[%s1696_s11 + $0x10] sm:$0xff]  }
 0x11a   : > { %v1272_v23 = vpop.f32.mrb[3].mxu0  ;;  %568 = vmax.xlane.f32.xlu0 %v567_v22  ;;  %v1278_v25 = vpop.f32.mrb[3].mxu1 }
 0x11b   : > { %v1424_v23 = vld [vmem:[%s1696_s11 + $0x18] sm:$0xff]  }
 0x11e   : > { %571 = vmax.xlane.f32.xlu0 %v570_v26 }
 0x11f   : > { %v318_v27 = vpop.f32.mrb[4].mxu0  ;;  %v364_v30 = vpop.f32.mrb[4].mxu1 }
 0x120   : > { %v560_v28 = vsel %vm1743_vm1, %v318_v27, -1e+30  ;;  %v1283_v29 = vpop.f32.mrb[5].mxu0  ;;  %v561_v32 = vsel %vm1743_vm1, %v364_v30, -1e+30  ;;  %v1289_v33 = vpop.f32.mrb[5].mxu1 }
 0x121   : > { %v321_v31 = vpop.f32.mrb[6].mxu0  ;;  %v573_v34 = vsel %vm566_vm2, %v560_v28, -inf  ;;  %v367_v36 = vpop.f32.mrb[6].mxu1  ;;  %v576_v38 = vsel %vm566_vm2, %v561_v32, -inf }
 0x122   : > { %v1284_v35 = vpop.f32.mrb[7].mxu0  ;;  %574 = vmax.xlane.f32.xlu1 %v573_v34  ;;  %v1290_v37 = vpop.f32.mrb[7].mxu1 }
 0x126   : > { %577 = vmax.xlane.f32.xlu1 %v576_v38  ;;  %v1426_v38 = vld [vmem:[%s1696_s11 + $0x28] sm:$0xff]  }
 0x127   : > { %v410_v39 = vpop.f32.mrb[8].mxu0  ;;  %v456_v41 = vpop.f32.mrb[8].mxu1 }
 0x128   : > { %v562_v40 = vsel %vm1743_vm1, %v410_v39, -1e+30  ;;  %v1295_v42 = vpop.f32.mrb[9].mxu0  ;;  %v563_v43 = vsel %vm1743_vm1, %v456_v41, -1e+30  ;;  %v1301_v45 = vpop.f32.mrb[9].mxu1 }
 0x129   : > { %v413_v44 = vpop.f32.mrb[10].mxu0  ;;  %v579_v46 = vsel %vm566_vm2, %v562_v40, -inf  ;;  %v582_v47 = vsel %vm566_vm2, %v563_v43, -inf  ;;  %v459_v49 = vpop.f32.mrb[10].mxu1 }
 0x12a   : > { %580 = vmax.xlane.f32.xlu0 %v579_v46  ;;  %v1296_v48 = vpop.f32.mrb[11].mxu0  ;;  %583 = vmax.xlane.f32.xlu1 %v582_v47  ;;  %v1302_v50 = vpop.f32.mrb[11].mxu1 }
 0x12b   : > { %v1428_v48 = vld [vmem:[%s1696_s11 + $0x38] sm:$0xff]  }
 0x12f   : > { %v502_v51 = vpop.f32.mrb[12].mxu0  ;;  %v548_v53 = vpop.f32.mrb[12].mxu1 }
 0x130   : > { %v1773_v52 = vsel %vm1743_vm1, %v502_v51, -1e+30  ;;  %v1307_v54 = vpop.f32.mrb[13].mxu0  ;;  %v1777_v55 = vsel %vm1743_vm1, %v548_v53, -1e+30  ;;  %v1313_v57 = vpop.f32.mrb[13].mxu1 }
 0x131   : > { %v505_v56 = vpop.f32.mrb[14].mxu0  ;;  %v585_v58 = vsel %vm566_vm2, %v1773_v52, -inf  ;;  %v588_v59 = vsel %vm566_vm2, %v1777_v55, -inf  ;;  %v551_v61 = vpop.f32.mrb[14].mxu1 }
 0x132   : > { %586 = vmax.xlane.f32.xlu0 %v585_v58  ;;  %v1308_v60 = vpop.f32.mrb[15].mxu0  ;;  %589 = vmax.xlane.f32.xlu1 %v588_v59  ;;  %v1314_v62 = vpop.f32.mrb[15].mxu1 }
 0x1a7   : > { %v569_v2 = vpop.xlane.xlu0 %568 }
 0x1a8   : > { %v591_v3 = vsub.f32 %v1749_v16, %v569_v2 }
 0x1aa   : > { %v599_v4 = vmul.f32 1.442695, %v591_v3 }
 0x1ab   : > { %v572_v5 = vpop.xlane.xlu0 %571 }
 0x1ac   : > { %1429 = vpow2.f32 %v599_v4  ;;  %v592_v6 = vsub.f32 %v1753_v20, %v572_v5 }
 0x1ae   : > { %v601_v7 = vmul.f32 1.442695, %v592_v6 }
 0x1af   : > { %v575_v8 = vpop.xlane.xlu1 %574 }
 0x1b0   : > { %1431 = vpow2.f32 %v601_v7  ;;  %v593_v9 = vsub.f32 %v560_v28, %v575_v8  ;;  %v1425_v28 = vld [vmem:[%s1696_s11 + $0x20] sm:$0xff]  }
 0x1b2   : > { %v603_v10 = vmul.f32 1.442695, %v593_v9 }
 0x1b3   : > { %v578_v11 = vpop.xlane.xlu1 %577 }
 0x1b4   : > { %1433 = vpow2.f32 %v603_v10  ;;  %v594_v12 = vsub.f32 %v561_v32, %v578_v11 }
 0x1b6   : > { %v1430_v13 = vpop.eup %1429  ;;  %v605_v14 = vmul.f32 1.442695, %v594_v12 }
 0x1b7   : > { %v581_v16 = vpop.xlane.xlu0 %580  ;;  %v647_v17 = vpack.c.bf16 %v1430_v13, %v1430_v13  ;;  %v584_v18 = vpop.xlane.xlu1 %583  ;;  %v615_v31 = vsel %vm566_vm2, %v1430_v13, 0.0 }
 0x1b8   : > { %1435 = vpow2.f32 %v605_v14  ;;  %v595_v19 = vsub.f32 %v562_v40, %v581_v16  ;;  %v596_v21 = vsub.f32 %v563_v43, %v584_v18  ;;  %v1427_v43 = vld [vmem:[%s1696_s11 + $0x30] sm:$0xff]  }
 0x1b9   : > { %1318 = vmatmul.mubr.msk.bf16.vlgmr.msra.gmra.mrb[16].mxu0 %vm677_vm3, %v647_v17 }
 0x1ba   : > { %v1432_v20 = vpop.eup %1431  ;;  %v607_v22 = vmul.f32 1.442695, %v595_v19  ;;  %1328 = vmatpush3.bf16.msra.mxu0 %v1423_v15  ;;  %1329 = vmatprep.mubr.msk.bf16.mxu0 %vm1563_vm0, %v1562_v0  ;;  %v609_v24 = vmul.f32 1.442695, %v596_v21 }
 0x1bb   : > { %v618_v25 = vsel %vm566_vm2, %v1432_v20, 0.0  ;;  %v648_v26 = vpack.c.bf16 %v1432_v20, %v1432_v20  ;;  %1339 = vmatprep.subr.bf16.mxu0 %v1562_v0 }
 0x1bc   : > { %1437 = vpow2.f32 %v607_v22  ;;  %619 = vadd.xlane.f32.xlu0 %v618_v25 }
 0x1bd   : > { %1439 = vpow2.f32 %v609_v24  ;;  %1324 = vmatmul.mubr.msk.bf16.vlgmr.msra.gmra.mrb[16].mxu1 %vm677_vm3, %v648_v26 }
 0x1be   : > { %v1434_v27 = vpop.eup %1433  ;;  %1334 = vmatpush3.bf16.msra.mxu1 %v1424_v23  ;;  %1335 = vmatprep.mubr.msk.bf16.mxu1 %vm1563_vm0, %v1562_v0 }
 0x1bf   : > { %v587_v29 = vpop.xlane.xlu0 %586  ;;  %v621_v30 = vsel %vm566_vm2, %v1434_v27, 0.0  ;;  %v649_v32 = vpack.c.bf16 %v1434_v27, %v1434_v27  ;;  %1345 = vmatprep.subr.bf16.mxu1 %v1562_v0  ;;  %v590_v33 = vpop.xlane.xlu1 %589 }
 0x1c0   : > { %v597_v34 = vsub.f32 %v1773_v52, %v587_v29  ;;  %622 = vadd.xlane.f32.xlu1 %v621_v30  ;;  %616 = vadd.xlane.f32.xlu0 %v615_v31  ;;  %v598_v35 = vsub.f32 %v1777_v55, %v590_v33 }
 0x1c1   : > { %1330 = vmatmul.mubr.msk.bf16.vlgmr.msra.gmra.mrb[20].mxu0 %vm677_vm3, %v649_v32 }
 0x1c2   : > { %v1436_v36 = vpop.eup %1435  ;;  %v611_v37 = vmul.f32 1.442695, %v597_v34  ;;  %1340 = vmatpush3.bf16.msra.mxu0 %v1425_v28  ;;  %1341 = vmatprep.mubr.msk.bf16.mxu0 %vm1563_vm0, %v1562_v0  ;;  %v613_v39 = vmul.f32 1.442695, %v598_v35 }
 0x1c3   : > { %v624_v40 = vsel %vm566_vm2, %v1436_v36, 0.0  ;;  %v650_v41 = vpack.c.bf16 %v1436_v36, %v1436_v36  ;;  %1351 = vmatprep.subr.bf16.mxu0 %v1562_v0 }
 0x1c4   : > { %1441 = vpow2.f32 %v611_v37  ;;  %625 = vadd.xlane.f32.xlu1 %v624_v40 }
 0x1c5   : > { %1443 = vpow2.f32 %v613_v39  ;;  %1336 = vmatmul.mubr.msk.bf16.vlgmr.msra.gmra.mrb[20].mxu1 %vm677_vm3, %v650_v41 }
 0x1c6   : > { %v1438_v42 = vpop.eup %1437  ;;  %1346 = vmatpush3.bf16.msra.mxu1 %v1426_v38  ;;  %1347 = vmatprep.mubr.msk.bf16.mxu1 %vm1563_vm0, %v1562_v0 }
 0x1c7   : > { %v1440_v44 = vpop.eup %1439  ;;  %v627_v45 = vsel %vm566_vm2, %v1438_v42, 0.0  ;;  %v651_v46 = vpack.c.bf16 %v1438_v42, %v1438_v42  ;;  %1357 = vmatprep.subr.bf16.mxu1 %v1562_v0 }
 0x1c8   : > { %v630_v47 = vsel %vm566_vm2, %v1440_v44, 0.0  ;;  %628 = vadd.xlane.f32.xlu0 %v627_v45  ;;  %v652_v49 = vpack.c.bf16 %v1440_v44, %v1440_v44 }
 0x1c9   : > { %631 = vadd.xlane.f32.xlu1 %v630_v47  ;;  %1342 = vmatmul.mubr.msk.bf16.vlgmr.msra.gmra.mrb[24].mxu0 %vm677_vm3, %v651_v46 }
 0x1ca   : > { %1352 = vmatpush3.bf16.msra.mxu0 %v1427_v43  ;;  %1353 = vmatprep.mubr.msk.bf16.mxu0 %vm1563_vm0, %v1562_v0 }
 0x1cd   : > { %1348 = vmatmul.mubr.msk.bf16.vlgmr.msra.gmra.mrb[24].mxu1 %vm677_vm3, %v652_v49 }
 0x1ce   : > { %v1442_v50 = vpop.eup %1441  ;;  %1358 = vmatpush3.bf16.msra.mxu1 %v1428_v48  ;;  %1359 = vmatprep.mubr.msk.bf16.mxu1 %vm1563_vm0, %v1562_v0 }
 0x1cf   : > { %v1444_v51 = vpop.eup %1443  ;;  %v633_v52 = vsel %vm566_vm2, %v1442_v50, 0.0  ;;  %v653_v53 = vpack.c.bf16 %v1442_v50, %v1442_v50 }
 0x1d0   : > { %v636_v54 = vsel %vm566_vm2, %v1444_v51, 0.0  ;;  %634 = vadd.xlane.f32.xlu0 %v633_v52  ;;  %v654_v55 = vpack.c.bf16 %v1444_v51, %v1444_v51 }
 0x1d1   : > { %637 = vadd.xlane.f32.xlu1 %v636_v54  ;;  %1354 = vmatmul.mubr.msk.bf16.vlgmr.msra.gmra.mrb[28].mxu0 %vm677_vm3, %v653_v53 }
 0x1d5   : > { %1360 = vmatmul.mubr.msk.bf16.vlgmr.msra.gmra.mrb[28].mxu1 %vm677_vm3, %v654_v55 }
 0x249   : > { %v620_v56 = vpop.xlane.xlu0 %619 }
 0x24a   : > { %v640_v59 = vmax.f32 %v620_v56, 1e-30 }
 0x24c   : > { %1445 = vrcp.f32 %v640_v59 }
 0x24d   : > { %v623_v57 = vpop.xlane.xlu1 %622  ;;  %v617_v58 = vpop.xlane.xlu0 %616 }
 0x24e   : > { %v639_v60 = vmax.f32 %v617_v58, 1e-30  ;;  %v641_v0 = vmax.f32 %v623_v57, 1e-30 }
 0x250   : > { %1447 = vrcp.f32 %v639_v60 }
 0x251   : > { %v626_v61 = vpop.xlane.xlu1 %625  ;;  %1449 = vrcp.f32 %v641_v0 }
 0x252   : > { %v642_v62 = vmax.f32 %v626_v61, 1e-30 }
 0x254   : > { %1451 = vrcp.f32 %v642_v62 }
 0x255   : > { %v629_v63 = vpop.xlane.xlu0 %628 }
 0x256   : > { %v643_v3 = vmax.f32 %v629_v63, 1e-30  ;;  %v632_v5 = vpop.xlane.xlu1 %631  ;;  %v1446_v7 = vpop.eup %1445 }
 0x257   : > { %v644_v12 = vmax.f32 %v632_v5, 1e-30 }
 0x258   : > { %1453 = vrcp.f32 %v643_v3 }
 0x259   : > { %1455 = vrcp.f32 %v644_v12 }
 0x25a   : > { %v1448_v11 = vpop.eup %1447 }
 0x25b   : > { %v1450_v18 = vpop.eup %1449 }
 0x25d   : > { %v635_v14 = vpop.xlane.xlu0 %634 }
 0x25e   : > { %v645_v23 = vmax.f32 %v635_v14, 1e-30  ;;  %v638_v25 = vpop.xlane.xlu1 %637  ;;  %v1452_v28 = vpop.eup %1451 }
 0x25f   : > { %v646_v33 = vmax.f32 %v638_v25, 1e-30 }
 0x260   : > { %1457 = vrcp.f32 %v645_v23 }
 0x261   : > { %1459 = vrcp.f32 %v646_v33 }
 0x262   : > { %v1454_v37 = vpop.eup %1453 }
 0x263   : > { %v1456_v45 = vpop.eup %1455 }
 0x26a   : > { %v1458_v53 = vpop.eup %1457 }
 0x26b   : > { %v1460_v0 = vpop.eup %1459 }
 0x28c   : > { %v715_v1 = vpop.f32.mrb[16].mxu0 }
 0x28d   : > { %v1319_v2 = vpop.f32.mrb[17].mxu0  ;;  %v1065_v15 = vmul.f32 %v1448_v11, %v715_v1 }
 0x28e   : > { %v718_v4 = vpop.f32.mrb[18].mxu0 }
 0x28f   : > { %v1320_v6 = vpop.f32.mrb[19].mxu0 }
 0x290   : > { %v764_v8 = vpop.f32.mrb[16].mxu1 }
 0x291   : > { %v1067_v9 = vmul.f32 %v1446_v7, %v764_v8  ;;  %v1325_v10 = vpop.f32.mrb[17].mxu1 }
 0x292   : > { %v767_v13 = vpop.f32.mrb[18].mxu1 }
 0x293   : > { %v1088_v16 = vrot.slane %v1067_v9, 7  ;;  %v1326_v17 = vpop.f32.mrb[19].mxu1 }
 0x294   : > { %v813_v19 = vpop.f32.mrb[20].mxu0 }
 0x295   : > { %v1090_v21 = vsel %vm1089_vm4, %v1088_v16, %v1065_v15  ;;  %v1069_v20 = vmul.f32 %v1450_v18, %v813_v19  ;;  %v1331_v22 = vpop.f32.mrb[21].mxu0 }
 0x296   : > { %v816_v24 = vpop.f32.mrb[22].mxu0 }
 0x297   : > { %v1091_v26 = vrot.slane %v1069_v20, 6  ;;  %v1332_v27 = vpop.f32.mrb[23].mxu0 }
 0x298   : > { %v862_v29 = vpop.f32.mrb[20].mxu1 }
 0x299   : > { %v1093_v30 = vsel %vm1092_vm5, %v1091_v26, %v1090_v21  ;;  %v1071_v31 = vmul.f32 %v1452_v28, %v862_v29  ;;  %v1337_v32 = vpop.f32.mrb[21].mxu1 }
 0x29a   : > { %v865_v34 = vpop.f32.mrb[22].mxu1 }
 0x29b   : > { %v1094_v35 = vrot.slane %v1071_v31, 5  ;;  %v1338_v36 = vpop.f32.mrb[23].mxu1 }
 0x29c   : > { %v911_v38 = vpop.f32.mrb[24].mxu0 }
 0x29d   : > { %v1096_v39 = vsel %vm1095_vm6, %v1094_v35, %v1093_v30  ;;  %v1073_v40 = vmul.f32 %v1454_v37, %v911_v38  ;;  %v1343_v41 = vpop.f32.mrb[25].mxu0 }
 0x29e   : > { %v914_v42 = vpop.f32.mrb[26].mxu0 }
 0x29f   : > { %v1097_v43 = vrot.slane %v1073_v40, 4  ;;  %v1344_v44 = vpop.f32.mrb[27].mxu0 }
 0x2a0   : > { %v960_v46 = vpop.f32.mrb[24].mxu1 }
 0x2a1   : > { %v1099_v47 = vsel %vm1098_vm7, %v1097_v43, %v1096_v39  ;;  %v1075_v48 = vmul.f32 %v1456_v45, %v960_v46  ;;  %v1349_v49 = vpop.f32.mrb[25].mxu1 }
 0x2a2   : > { %v963_v50 = vpop.f32.mrb[26].mxu1 }
 0x2a3   : > { %v1100_v51 = vrot.slane %v1075_v48, 3  ;;  %v1350_v52 = vpop.f32.mrb[27].mxu1 }
 0x2a4   : > { %v1009_v54 = vpop.f32.mrb[28].mxu0 }
 0x2a5   : > { %v1102_v55 = vsel %vm1101_vm8, %v1100_v51, %v1099_v47  ;;  %v1077_v56 = vmul.f32 %v1458_v53, %v1009_v54  ;;  %v1355_v57 = vpop.f32.mrb[29].mxu0 }
 0x2a6   : > { %v1012_v58 = vpop.f32.mrb[30].mxu0 }
 0x2a7   : > { %v1103_v59 = vrot.slane %v1077_v56, 2  ;;  %v1356_v60 = vpop.f32.mrb[31].mxu0 }
 0x2a8   : > { %v1058_v61 = vpop.f32.mrb[28].mxu1 }
 0x2a9   : > { %v1105_v62 = vsel %vm1104_vm9, %v1103_v59, %v1102_v55  ;;  %v1079_v63 = vmul.f32 %v1460_v0, %v1058_v61  ;;  %v1361_v1 = vpop.f32.mrb[29].mxu1 }
 0x2aa   : > { %v1061_v2 = vpop.f32.mrb[30].mxu1 }
 0x2ab   : > { %v1106_v3 = vrot.slane %v1079_v63, 1  ;;  %v1362_v4 = vpop.f32.mrb[31].mxu1 }
 0x2ad   : > { %v1108_v5 = vsel %vm1107_vm10, %v1106_v3, %v1105_v62 }
 0x2ae   : > { %1110 = vst [vmem:[%s164_s12] sm:$0xff] %v1108_v5 }
 0x2af   : > { %1504 = shalt.err (!%p1501_p2)
}
 0x2b0   : > { %s1505_s30 = scalar_lea.hbm %s1834_s21, 128  ;;  %s1509_s10 = scalar_lea.hbm %s1881_s3, 256 }
 0x2b1   : > { %p1506_p4 = scmp.ne.s32.totalorder %s1834_s21, %s1505_s30  ;;  %p1510_p9 = scmp.lt.u32.totalorder %s1834_s21, %s1881_s3 }
 0x2b2   : > { %p1511_p1 = scmp.lt.u32.totalorder %s1509_s10, %s1505_s30  ;;  %p1513_p6 = scmp.lt.u32.totalorder %s1505_s30, %s1834_s21 }
 0x2b3   : > { %p1507_p5 = pnand %p1506_p4, %p1890_p11 }
 0x2b4   : > { %p1512_p3 = por %p1511_p1, %p1510_p9 }
 0x2b5   : > { %p1508_p7 = pneg %p1507_p5 }
 0x2b6   : > { %p1514_p12 = por %p1513_p6, %p1512_p3 }
 0x2b8   : > { %p1515_p13 = pnand %p1514_p12, %p1508_p7 }
 0x2ba   : > { %1518 = shalt.err (!%p1515_p13)
}
 0x2bb   : > { %1365 = dma.vmem_to_hbm [thread:$0]  (%p1890_p11), %s1836_s13, 128, %s1834_s21, %s1112_s23  }
 0x2bc PF: > { %s1137_s5 = sand.u32 1, %s1545_s14   ;;  %p1891_p8 = scmp.ne.s32.totalorder %s1886_s26, 0 }
 0x2bd   : > { %p1892_p10 = scmp.ge.s32.totalorder %s1557_s17, 2  ;;  %s1138_s7 = scalar_lea.sflag [#allocation6], %s1137_s5 }
 0x2bf   : > { %p1372_p0 = pnand %p1892_p10, %p1891_p8 }
 0x2c1   : > { %1540 = dma.done.wait (!%p1372_p0), %s1138_s7, 128  }
 0x2c2   : > { %1542 = vsyncadd (!%p1372_p0), %s1138_s7, 4294967168  ;;  %p17_p2 = scmp.ge.s32.totalorder %s1613_s19, 4   ;;  %s1893_s14 = smov %s1549_s15 }
 0x2c3   : > { %s1894_s15 = smov %s1553_s16  ;;  %s1895_s16 = smov %s1625_s22 }
 0x2c4   : > { %s1896_s17 = smov %s1613_s19  ;;  %19 = sbr.rel (!%p17_p2) target bundleno = 7 (0x7), region = 73 }
 0x2cb   :  { %1143 = vsyncpa [#allocation5], 1 }
 0x2cc   :  { %1145 = vsyncpa [#allocation5 + $0x1], 1 }
 0x2cd   :  { %1146 = vsyncpa [#allocation6], 1 }
 0x2ce   :  { %1148 = vsyncpa [#allocation6 + $0x1], 1 }

</bundles_post_ra>
